<compile_context>
chip_gen: v6e
topology: v6e:2x2x1
jax: 0.10.0
libtpu: 0.0.40
codegen_flags: <defaults>
</compile_context>

<pallas_src>
import functools

import jax
import jax.numpy as jnp
import numpy as np
from jax.experimental import pallas as pl
from jax.experimental.pallas import tpu as pltpu


# ----------------------------------------------------------------------------
# Helpers (resolved at trace time; activation names are static Python strings)
# ----------------------------------------------------------------------------
def _sigmoid(x):
    # EUP-friendly, numerically exact sigmoid: one tanh (EUP slot, idle in this
    # kernel) + two cheap VALU ops; avoids the divide of the default lowering.
    return 0.5 * jnp.tanh(0.5 * x) + 0.5


def _apply_activation(h, name):
    if name == "swish":
        return h * _sigmoid(h)          # swish(x) = x * sigmoid(x)
    if name == "relu":
        return jnp.maximum(h, 0.0)
    if name == "tanH":
        return jnp.tanh(h)
    return h                            # no / unknown activation -> identity


# ----------------------------------------------------------------------------
# Pallas kernel: fused 3-layer MLP forward for one batch tile (transposed domain)
# ----------------------------------------------------------------------------
def _dnn_kernel(x_ref, w1_ref, b1_ref, w2_ref, b2_ref, w3_ref, b3_ref, o_ref,
                *, activation_input, activation_hidden):
    x = x_ref[...]                                            # (TB, D_in)

    # h1^T = W1 @ x^T : contract the D_in axis of both operands so the batch
    # tile lands on the lane axis of every intermediate.
    h = jax.lax.dot_general(w1_ref[...], x, (((1,), (1,)), ((), ())),
                            preferred_element_type=jnp.float32)   # (H1, TB) f32
    h = h + b1_ref[...]                                       # bias column (H1,1)
    h = _apply_activation(h, activation_input)

    h = jnp.dot(w2_ref[...], h.astype(w2_ref.dtype),
                preferred_element_type=jnp.float32)           # (H2, TB) f32
    h = h + b2_ref[...]
    h = _apply_activation(h, activation_hidden)
    # TODO(synk): dropout is treated as identity (inference mode); training-mode
    # parity would use pltpu.prng_seed + pltpu.stateful_bernoulli here.

    y = jnp.dot(w3_ref[...], h.astype(w3_ref.dtype),
                preferred_element_type=jnp.float32)           # (D_out, TB) f32
    y = y + b3_ref[...]
    o_ref[...] = _sigmoid(y).astype(o_ref.dtype)              # lane-dense store


# ----------------------------------------------------------------------------
# Wrapper: batch-tiled pallas_call (no padding, no output slice)
# ----------------------------------------------------------------------------
def dnn_forward(x, w1, b1, w2, b2, w3, b3, *,
                activation_input, activation_hidden,
                block_batch=1024, compute_dtype=jnp.bfloat16):
    batch, d_in = x.shape
    h1 = w1.shape[0]
    h2 = w2.shape[0]
    d_out = w3.shape[0]

    # Stream x / hold weights in compute_dtype (bf16 halves HBM traffic on the
    # only streamed tensor); biases + accumulation + activations stay f32.
    x_c = jnp.asarray(x, compute_dtype)
    w1_c = jnp.asarray(w1, compute_dtype)                     # (H1, D_in)
    w2_c = jnp.asarray(w2, compute_dtype)                     # (H2, H1)
    w3_c = jnp.asarray(w3, compute_dtype)                     # (D_out, H2)
    b1c = jnp.asarray(b1, jnp.float32).reshape(h1, 1)
    b2c = jnp.asarray(b2, jnp.float32).reshape(h2, 1)
    b3c = jnp.asarray(b3, jnp.float32).reshape(d_out, 1)

    # Batch tile (main tuning knob). It is the lane axis of the output block, so
    # keep it a multiple of 128 (unless the whole batch is a single small block),
    # and cap it so the grid keeps >= 2 steps for megacore / v7x sharding.
    if batch <= 128:
        tb = batch
    else:
        tb = max(128, min(block_batch, batch))
        tb = (tb // 128) * 128
        if batch > 2 * 128:
            half = -(-((batch + 1) // 2) // 128) * 128
            tb = min(tb, half)
    grid = (pl.cdiv(batch, tb),)   # ragged last block is masked by Pallas

    kernel = functools.partial(
        _dnn_kernel,
        activation_input=str(activation_input),
        activation_hidden=str(activation_hidden),
    )

    out_t = pl.pallas_call(
        kernel,
        grid=grid,
        in_specs=[
            pl.BlockSpec((tb, d_in), lambda i: (i, 0)),       # x: streamed per tile
            pl.BlockSpec((h1, d_in), lambda i: (0, 0)),       # W1 (resident)
            pl.BlockSpec((h1, 1), lambda i: (0, 0)),          # b1 column
            pl.BlockSpec((h2, h1), lambda i: (0, 0)),         # W2
            pl.BlockSpec((h2, 1), lambda i: (0, 0)),          # b2
            pl.BlockSpec((d_out, h2), lambda i: (0, 0)),      # W3
            pl.BlockSpec((d_out, 1), lambda i: (0, 0)),       # b3
        ],
        # Lane-dense output: last dim of the block is the batch tile (>=128).
        out_specs=pl.BlockSpec((d_out, tb), lambda i: (0, i)),
        out_shape=jax.ShapeDtypeStruct((d_out, batch), jnp.float32),
        compiler_params=pltpu.CompilerParams(
            dimension_semantics=("parallel",),                # independent tiles
        ),
        # NOTE: VMEM footprint per step is tiny (<1 MiB at tb=1024), so the
        # default scoped-VMEM limit is fine on v5e/v6e/v7x. If the x DMA is ever
        # exposed after tile sweeps, add pipeline_mode=pl.Buffered(3) to in_specs[0].
    )(x_c, w1_c, b1c, w2_c, b2c, w3_c, b3c)

    # Cheap un-transpose (only d_out f32 per row) done by XLA outside the kernel.
    return out_t.T


# ----------------------------------------------------------------------------
# Pure-JAX reference mirroring the PyTorch module (eval mode) for verification
# ----------------------------------------------------------------------------
def dnn_reference(x, w1, b1, w2, b2, w3, b3, *, activation_input, activation_hidden):
    x = jnp.asarray(x, jnp.float32)

    def act(h, name):
        if name == "swish":
            return h * jax.nn.sigmoid(h)
        if name == "relu":
            return jnp.maximum(h, 0.0)
        if name == "tanH":
            return jnp.tanh(h)
        return h

    h = act(x @ w1.T + b1, activation_input)
    h = act(h @ w2.T + b2, activation_hidden)     # dropout = identity in eval
    return jax.nn.sigmoid(h @ w3.T + b3)


if __name__ == "__main__":
    # Small deterministic example consistent with the module's forward:
    # D_in=32 -> h_sizes_linear=64 -> h_sizes_hidden=32 -> D_out=8
    batch, d_in, h1, h2, d_out = 512, 32, 64, 32, 8
    activation_input, activation_hidden = "swish", "relu"

    key = jax.random.PRNGKey(0)
    kx, k1, k2, k3, k4, k5, k6 = jax.random.split(key, 7)
    x = jax.random.normal(kx, (batch, d_in), jnp.float32)

    # PyTorch-default-style uniform Linear init (deterministic via PRNGKey(0))
    s1 = 1.0 / np.sqrt(d_in)
    w1 = jax.random.uniform(k1, (h1, d_in), jnp.float32, -s1, s1)
    b1 = jax.random.uniform(k2, (h1,), jnp.float32, -s1, s1)
    s2 = 1.0 / np.sqrt(h1)
    w2 = jax.random.uniform(k3, (h2, h1), jnp.float32, -s2, s2)
    b2 = jax.random.uniform(k4, (h2,), jnp.float32, -s2, s2)
    s3 = 1.0 / np.sqrt(h2)
    w3 = jax.random.uniform(k5, (d_out, h2), jnp.float32, -s3, s3)
    b3 = jax.random.uniform(k6, (d_out,), jnp.float32, -s3, s3)

    ref = dnn_reference(x, w1, b1, w2, b2, w3, b3,
                        activation_input=activation_input,
                        activation_hidden=activation_hidden)

    # f32 compute path: tight check of the kernel math / layout handling.
    out_f32 = dnn_forward(x, w1, b1, w2, b2, w3, b3,
                          activation_input=activation_input,
                          activation_hidden=activation_hidden,
                          block_batch=1024, compute_dtype=jnp.float32)
    out_f32 = jax.block_until_ready(out_f32)
    np.testing.assert_allclose(np.asarray(out_f32), np.asarray(ref),
                               rtol=1e-4, atol=1e-5)

    # Default bf16-streaming path (f32 accumulation): loosened tolerance.
    out_bf16 = dnn_forward(x, w1, b1, w2, b2, w3, b3,
                           activation_input=activation_input,
                           activation_hidden=activation_hidden,
                           block_batch=1024)
    out_bf16 = jax.block_until_ready(out_bf16)
    np.testing.assert_allclose(np.asarray(out_bf16), np.asarray(ref),
                               rtol=3e-2, atol=3e-2)

    print("KERNEL_OK")
</pallas_src>

<mosaic_0001>
module attributes {stable_mosaic.version = 11 : i64} {
  func.func @_dnn_kernel(%arg0: i32, %arg1: memref<256x32xf32, #tpu.memory_space<vmem>>, %arg2: memref<64x32xf32, #tpu.memory_space<vmem>>, %arg3: memref<64x1xf32, #tpu.memory_space<vmem>>, %arg4: memref<32x64xf32, #tpu.memory_space<vmem>>, %arg5: memref<32x1xf32, #tpu.memory_space<vmem>>, %arg6: memref<8x32xf32, #tpu.memory_space<vmem>>, %arg7: memref<8x1xf32, #tpu.memory_space<vmem>>, %arg8: memref<8x256xf32, #tpu.memory_space<vmem>>) attributes {dimension_semantics = [#tpu.dimension_semantics<parallel>], iteration_bounds = array<i64: 2>, scalar_prefetch = 0 : i64, scratch_operands = 0 : i64, tpu.core_type = #tpu.core_type<tc>, window_params = [{transform_indices = @transform_0, window_bounds = array<i64: 256, 32>}, {pipeline_mode = #tpu.pipeline_mode<synchronous>, transform_indices = @transform_1, window_bounds = array<i64: 64, 32>}, {pipeline_mode = #tpu.pipeline_mode<synchronous>, transform_indices = @transform_2, window_bounds = array<i64: 64, 1>}, {pipeline_mode = #tpu.pipeline_mode<synchronous>, transform_indices = @transform_3, window_bounds = array<i64: 32, 64>}, {pipeline_mode = #tpu.pipeline_mode<synchronous>, transform_indices = @transform_4, window_bounds = array<i64: 32, 1>}, {pipeline_mode = #tpu.pipeline_mode<synchronous>, transform_indices = @transform_5, window_bounds = array<i64: 8, 32>}, {pipeline_mode = #tpu.pipeline_mode<synchronous>, transform_indices = @transform_6, window_bounds = array<i64: 8, 1>}, {transform_indices = @transform_7, window_bounds = array<i64: 8, 256>}]} {
    %c0 = arith.constant 0 : index
    %c0_0 = arith.constant 0 : index
    %0 = vector.load %arg1[%c0, %c0_0] : memref<256x32xf32, #tpu.memory_space<vmem>>, vector<256x32xf32>
    %c0_1 = arith.constant 0 : index
    %c0_2 = arith.constant 0 : index
    %1 = vector.load %arg2[%c0_1, %c0_2] : memref<64x32xf32, #tpu.memory_space<vmem>>, vector<64x32xf32>
    %cst = arith.constant dense<0.000000e+00> : vector<64x256xf32>
    %2 = tpu.matmul %1, %0, %cst {dimension_numbers = #tpu.dot_dimension_numbers<[1], [1], [0], [0], [0, 0, 1, 0], [], []>} : vector<64x32xf32>, vector<256x32xf32>, vector<64x256xf32> -> vector<64x256xf32>
    %c0_3 = arith.constant 0 : index
    %c0_4 = arith.constant 0 : index
    %3 = vector.load %arg3[%c0_3, %c0_4] : memref<64x1xf32, #tpu.memory_space<vmem>>, vector<64x1xf32>
    %4 = vector.broadcast %3 : vector<64x1xf32> to vector<64x256xf32>
    %5 = arith.addf %2, %4 : vector<64x256xf32>
    %cst_5 = arith.constant 5.000000e-01 : f32
    %6 = vector.broadcast %cst_5 : f32 to vector<64x256xf32>
    %7 = arith.mulf %6, %5 : vector<64x256xf32>
    %8 = math.tanh %7 : vector<64x256xf32>
    %cst_6 = arith.constant 5.000000e-01 : f32
    %9 = vector.broadcast %cst_6 : f32 to vector<64x256xf32>
    %10 = arith.mulf %9, %8 : vector<64x256xf32>
    %cst_7 = arith.constant 5.000000e-01 : f32
    %11 = vector.broadcast %cst_7 : f32 to vector<64x256xf32>
    %12 = arith.addf %10, %11 : vector<64x256xf32>
    %13 = arith.mulf %5, %12 : vector<64x256xf32>
    %c0_8 = arith.constant 0 : index
    %c0_9 = arith.constant 0 : index
    %14 = vector.load %arg4[%c0_8, %c0_9] : memref<32x64xf32, #tpu.memory_space<vmem>>, vector<32x64xf32>
    %cst_10 = arith.constant dense<0.000000e+00> : vector<32x256xf32>
    %15 = tpu.matmul %14, %13, %cst_10 {dimension_numbers = #tpu.dot_dimension_numbers<[1], [0], [0], [1], [0, 0, 1, 1], [], []>} : vector<32x64xf32>, vector<64x256xf32>, vector<32x256xf32> -> vector<32x256xf32>
    %c0_11 = arith.constant 0 : index
    %c0_12 = arith.constant 0 : index
    %16 = vector.load %arg5[%c0_11, %c0_12] : memref<32x1xf32, #tpu.memory_space<vmem>>, vector<32x1xf32>
    %17 = vector.broadcast %16 : vector<32x1xf32> to vector<32x256xf32>
    %18 = arith.addf %15, %17 : vector<32x256xf32>
    %cst_13 = arith.constant 0.000000e+00 : f32
    %19 = vector.broadcast %cst_13 : f32 to vector<32x256xf32>
    %20 = arith.maximumf %18, %19 : vector<32x256xf32>
    %c0_14 = arith.constant 0 : index
    %c0_15 = arith.constant 0 : index
    %21 = vector.load %arg6[%c0_14, %c0_15] : memref<8x32xf32, #tpu.memory_space<vmem>>, vector<8x32xf32>
    %cst_16 = arith.constant dense<0.000000e+00> : vector<8x256xf32>
    %22 = tpu.matmul %21, %20, %cst_16 {dimension_numbers = #tpu.dot_dimension_numbers<[1], [0], [0], [1], [0, 0, 1, 1], [], []>} : vector<8x32xf32>, vector<32x256xf32>, vector<8x256xf32> -> vector<8x256xf32>
    %c0_17 = arith.constant 0 : index
    %c0_18 = arith.constant 0 : index
    %23 = vector.load %arg7[%c0_17, %c0_18] : memref<8x1xf32, #tpu.memory_space<vmem>>, vector<8x1xf32>
    %24 = vector.broadcast %23 : vector<8x1xf32> to vector<8x256xf32>
    %25 = arith.addf %22, %24 : vector<8x256xf32>
    %cst_19 = arith.constant 5.000000e-01 : f32
    %26 = vector.broadcast %cst_19 : f32 to vector<8x256xf32>
    %27 = arith.mulf %26, %25 : vector<8x256xf32>
    %28 = math.tanh %27 : vector<8x256xf32>
    %cst_20 = arith.constant 5.000000e-01 : f32
    %29 = vector.broadcast %cst_20 : f32 to vector<8x256xf32>
    %30 = arith.mulf %29, %28 : vector<8x256xf32>
    %cst_21 = arith.constant 5.000000e-01 : f32
    %31 = vector.broadcast %cst_21 : f32 to vector<8x256xf32>
    %32 = arith.addf %30, %31 : vector<8x256xf32>
    %c0_22 = arith.constant 0 : index
    %c0_23 = arith.constant 0 : index
    %33 = vector.load %arg8[%c0_22, %c0_23] : memref<8x256xf32, #tpu.memory_space<vmem>>, vector<8x256xf32>
    tpu.vector_store %arg8[%c0_22, %c0_23], %32 {strides = array<i32>} : memref<8x256xf32, #tpu.memory_space<vmem>>, vector<8x256xf32>,
    return
  }
  func.func @transform_0(%arg0: i32) -> (i32, i32) {
    %c0_i32 = arith.constant 0 : i32
    %c0_i32_0 = arith.constant 0 : i32
    return %arg0, %c0_i32 : i32, i32
  }
  func.func @transform_1(%arg0: i32) -> (i32, i32) {
    %c0_i32 = arith.constant 0 : i32
    %c0_i32_0 = arith.constant 0 : i32
    %c0_i32_1 = arith.constant 0 : i32
    return %c0_i32, %c0_i32_0 : i32, i32
  }
  func.func @transform_2(%arg0: i32) -> (i32, i32) {
    %c0_i32 = arith.constant 0 : i32
    %c0_i32_0 = arith.constant 0 : i32
    %c0_i32_1 = arith.constant 0 : i32
    return %c0_i32, %c0_i32_0 : i32, i32
  }
  func.func @transform_3(%arg0: i32) -> (i32, i32) {
    %c0_i32 = arith.constant 0 : i32
    %c0_i32_0 = arith.constant 0 : i32
    %c0_i32_1 = arith.constant 0 : i32
    return %c0_i32, %c0_i32_0 : i32, i32
  }
  func.func @transform_4(%arg0: i32) -> (i32, i32) {
    %c0_i32 = arith.constant 0 : i32
    %c0_i32_0 = arith.constant 0 : i32
    %c0_i32_1 = arith.constant 0 : i32
    return %c0_i32, %c0_i32_0 : i32, i32
  }
  func.func @transform_5(%arg0: i32) -> (i32, i32) {
    %c0_i32 = arith.constant 0 : i32
    %c0_i32_0 = arith.constant 0 : i32
    %c0_i32_1 = arith.constant 0 : i32
    return %c0_i32, %c0_i32_0 : i32, i32
  }
  func.func @transform_6(%arg0: i32) -> (i32, i32) {
    %c0_i32 = arith.constant 0 : i32
    %c0_i32_0 = arith.constant 0 : i32
    %c0_i32_1 = arith.constant 0 : i32
    return %c0_i32, %c0_i32_0 : i32, i32
  }
  func.func @transform_7(%arg0: i32) -> (i32, i32) {
    %c0_i32 = arith.constant 0 : i32
    %c0_i32_0 = arith.constant 0 : i32
    return %c0_i32, %arg0 : i32, i32
  }
}

</mosaic_0001>

<bundles_post_ra>
// kernel: tpu_custom_call.1
= control target key start
LH: loop header
LB: loop body
LE: loop exit
PB: predicated region body
PF: predicated region fallthrough
CT: control target
= control target key end

     0   :  { %12 = vsyncpa [#allocation3], 0  ;;  %s1591_s0 = inlined_call_operand.vmem [shape: f32[512,32], index: 0, kind: input, shape index: {}]   ;;  %s1592_s1 = inlined_call_operand.vmem [shape: f32[64,32], index: 1, kind: input, shape index: {}]   ;;  %s1593_s2 = inlined_call_operand.vmem [shape: f32[64,1], index: 2, kind: input, shape index: {}]   ;;  %s1594_s3 = inlined_call_operand.vmem [shape: f32[32,64], index: 3, kind: input, shape index: {}]   ;;  %s1595_s4 = inlined_call_operand.vmem [shape: f32[32,1], index: 4, kind: input, shape index: {}]   ;;  %s1596_s5 = inlined_call_operand.vmem [shape: f32[8,32], index: 5, kind: input, shape index: {}]   ;;  %s1597_s6 = inlined_call_operand.vmem [shape: f32[8,1], index: 6, kind: input, shape index: {}]   ;;  %s1598_s7 = inlined_call_operand.hbm [shape: f32[8,512], index: 7, kind: output, shape index: {}]  }
   0x1   :  { %14 = vsyncpa [#allocation3 + $0x1], 0  ;;  %s1275_s24 = smov 0   ;;  %s1277_s25 = smov 0  }
   0x2   :  { %s1279_s26 = smov 0   ;;  %s1281_s27 = smov 0  }
   0x3 LB: > { %s1296_s28 = sadd.s32 4294967295, %s1230_s27   ;;  %s985_s29 = sadd.s32 4294967294, %s1230_s27   ;;  %s1230_s27 = sphi %s1281_s27, %s1604_s27   ;;  %s1226_s26 = sphi %s1279_s26, %s1603_s26   ;;  %s1222_s25 = sphi %s1277_s25, %s1602_s25   ;;  %s1218_s24 = sphi %s1275_s24, %s1601_s24  }
   0x4   : > { %s1300_s30 = sadd.s32 1, %s1230_s27   ;;  %s179_s8 = sadd.s32 1, %s1226_s26 }
   0x5   : > { %s176_s9 = ssub.s32 %s1230_s27, %s1300_s30  ;;  %p189_p0 = scmp.ne.s32.totalorder %s1226_s26, %s1222_s25 }
   0x6   : > { %p177_p1 = scmp.eq.s32.totalorder %s176_s9, 0  ;;  %p190_p2 = scmp.eq.s32.totalorder %s1296_s28, 1 }
   0x7   : > { %p195_p3 = scmp.ne.s32.totalorder %s1222_s25, %s1218_s24  ;;  %p196_p4 = scmp.eq.s32.totalorder %s985_s29, 1 }
   0x8   : > { %s1311_s10 = scalar_select %p177_p1, %s1226_s26, %s179_s8  }
   0x9   : > { %p1313_p5 = por %p190_p2, %p189_p0  ;;  %p1317_p6 = por %p196_p4, %p195_p3 }
   0xa   : > { %p988_p7 = scmp.ge.s32.totalorder %s1230_s27, 1  ;;  %p241_p8 = scmp.lt.s32.totalorder %s1230_s27, 3 }
   0xc   : > { %p242_p9 = pnand %p988_p7, %p241_p8 }
   0xd   : > { %s990_s13 = sshll.u32 (!%p242_p9), %s1296_s28, 5  ;;  %s270_s15 = sand.u32 (!%p242_p9), 1, %s1222_s25  }
   0xe   : > { %245 = sbr.rel (%p242_p9) target bundleno = 799 (0x31f), region = 48  ;;  %p274_p10 = scmp.lt.s32.totalorder (!%p242_p9), %s990_s13, 63 }
   0xf   : > { %s989_s16 = sshll.u32 (!%p242_p9), %s270_s15, 4  ;;  %s1042_s17 = sshll.u32 (!%p242_p9), %s1296_s28, 8 }
  0x10   : > { %s272_s18 = scalar_lea.vmem (!%p242_p9), [#allocation2], %s989_s16  ;;  %s1234_s29 = smov (!%p242_p9), [#allocation2]  }
  0x11   : > { %s926_s19 = sshll.u32 (!%p242_p9), %s272_s18, 4  ;;  %s1174_s28 = sshll.u32 (!%p242_p9), %s1234_s29, 4  ;;  %s927_s19 = int_to_ptr.vmem [resolvable:$true] %s926_s19  ;;  %s1175_s28 = int_to_ptr.vmem [resolvable:$false] %s1174_s28 }
  0x12   : > { %s1170_s23 = scalar_lea.vmem (!%p242_p9), %s927_s19, 256  ;;  %s1176_s8 = scalar_lea.vmem (!%p242_p9), %s1175_s28, 512 }
  0x13   : > { %vm368_vm0 = vcmask 261120   ;;  %v1327_v0 = vld [vmem:[%s1592_s1] sm:$0xff]  ;;  %v1232_v1 = vmov 0   ;;  %v325_v2 = vld [vmem:[%s1593_s2 + $0x28] sm:$0xff]  ;;  %s1606_s13 = smov (!%p274_p10, %s990_s13), 63  ;;  %v327_v3 = vld [vmem:[%s1593_s2 + $0x38] sm:$0xff]  ;;  %p1171_p11 = scmp.ne.s32.totalorder %s927_s19, %s1170_s23 }
  0x14   : > { %1075 = vmatprep.mubr.msk.f32.mxu0 %vm368_vm0, %v1327_v0  ;;  %1133 = vset.pattern.permute.xlu1 %v1232_v1  ;;  %v324_v4 = vld [vmem:[%s1593_s2 + $0x20] sm:$0xff]  ;;  %s991_s22 = sshll.u32 %s1606_s13, 3  ;;  %v326_v5 = vld [vmem:[%s1593_s2 + $0x30] sm:$0xff]  ;;  %v323_v10 = vld [vmem:[%s1593_s2 + $0x18] sm:$0xff]  ;;  %v1233_v54 = vmov 0.0   ;;  %vm710_vm1 = vcmask 523264   ;;  %p1177_p0 = scmp.lt.s32.totalorder %s927_s19, %s1175_s28 }
  0x15   : > { %1132 = vset.pattern.permute.xlu0 %v1232_v1  ;;  %355 = vperm.xlu1 %1133, %v325_v2   ;;  %s1346_s14 = scalar_lea.vmem %s1591_s0, %s991_s22  ;;  %v322_v9 = vld [vmem:[%s1593_s2 + $0x10] sm:$0xff]  ;;  %v320_v13 = vld [vmem:[%s1593_s2] sm:$0xff]  ;;  %v321_v14 = vld [vmem:[%s1593_s2 + $0x8] sm:$0xff]  ;;  %s924_s22 = scalar_lea.hbm %s1598_s7, %s1042_s17 }
  0x16   : > { %365 = vperm.xlu0 %1132, %v327_v3   ;;  %v311_v6 = vld [vmem:[%s1346_s14 + $0xf8] sm:$0xff]  ;;  %v310_v8 = vld [vmem:[%s1346_s14 + $0xf0] sm:$0xff]  ;;  %v309_v12 = vld [vmem:[%s1346_s14 + $0xe8] sm:$0xff]  ;;  %787 = vmatprep.mubr.f32.mxu1 %v1233_v54  ;;  %p1172_p12 = pnand %p1171_p11, %p1313_p5  ;;  %p1178_p1 = scmp.lt.s32.totalorder %s1176_s8, %s1170_s23 }
  0x17   : > { %v295_v7 = vld [vmem:[%s1346_s14 + $0x78] sm:$0xff]  ;;  %1043 = vmatprep.subr.msk.mxu0 %vm368_vm0, %v311_v6  ;;  %v294_v11 = vld [vmem:[%s1346_s14 + $0x70] sm:$0xff]  ;;  %v293_v15 = vld [vmem:[%s1346_s14 + $0x68] sm:$0xff] }
  0x18   : > { %1044 = vmatpush3.xpose.msk.msra.mxu0 %vm368_vm0, %v295_v7  ;;  %v308_v16 = vld [vmem:[%s1346_s14 + $0xe0] sm:$0xff]  ;;  %v688_v17 = vld [vmem:[%s1595_s4 + $0x10] sm:$0xff]  ;;  %v689_v18 = vld [vmem:[%s1595_s4 + $0x18] sm:$0xff]  ;;  %p1173_p13 = pneg %p1172_p12  ;;  %p1179_p2 = por %p1178_p1, %p1177_p0 }
  0x19   : > { %350 = vperm.xlu1 %1133, %v324_v4   ;;  %1045 = vmatprep.subr.msk.mxu0 %vm368_vm0, %v310_v8  ;;  %v292_v19 = vld [vmem:[%s1346_s14 + $0x60] sm:$0xff]  ;;  %v307_v20 = vld [vmem:[%s1346_s14 + $0xd8] sm:$0xff]  ;;  %v687_v22 = vld [vmem:[%s1595_s4 + $0x8] sm:$0xff] }
  0x1a   : > { %360 = vperm.xlu0 %1132, %v326_v5   ;;  %v686_v21 = vld [vmem:[%s1595_s4] sm:$0xff]  ;;  %v291_v23 = vld [vmem:[%s1346_s14 + $0x58] sm:$0xff]  ;;  %v306_v24 = vld [vmem:[%s1346_s14 + $0xd0] sm:$0xff]  ;;  %p1180_p3 = pnand %p1179_p2, %p1173_p13 }
  0x1b   : > { %v821_v25 = vld [vmem:[%s1597_s6] sm:$0xff]  ;;  %v290_v26 = vld [vmem:[%s1346_s14 + $0x50] sm:$0xff]  ;;  %v305_v27 = vld [vmem:[%s1346_s14 + $0xc8] sm:$0xff] }
  0x1c   : > { %1046 = vmatpush3.xpose.msk.msra.mxu0 %vm368_vm0, %v294_v11  ;;  %v289_v28 = vld [vmem:[%s1346_s14 + $0x48] sm:$0xff]  ;;  %v304_v29 = vld [vmem:[%s1346_s14 + $0xc0] sm:$0xff]  ;;  %v303_v31 = vld [vmem:[%s1346_s14 + $0xb8] sm:$0xff] }
  0x1d   : > { %340 = vperm.xlu1 %1133, %v322_v9   ;;  %1047 = vmatprep.subr.msk.mxu0 %vm368_vm0, %v309_v12  ;;  %v288_v30 = vld [vmem:[%s1346_s14 + $0x40] sm:$0xff]  ;;  %v287_v32 = vld [vmem:[%s1346_s14 + $0x38] sm:$0xff]  ;;  %v302_v33 = vld [vmem:[%s1346_s14 + $0xb0] sm:$0xff] }
  0x1e   : > { %345 = vperm.xlu0 %1132, %v323_v10   ;;  %v286_v34 = vld [vmem:[%s1346_s14 + $0x30] sm:$0xff]  ;;  %v301_v35 = vld [vmem:[%s1346_s14 + $0xa8] sm:$0xff]  ;;  %v300_v37 = vld [vmem:[%s1346_s14 + $0xa0] sm:$0xff] }
  0x1f   : > { %v285_v36 = vld [vmem:[%s1346_s14 + $0x28] sm:$0xff]  ;;  %v284_v38 = vld [vmem:[%s1346_s14 + $0x20] sm:$0xff]  ;;  %v299_v39 = vld [vmem:[%s1346_s14 + $0x98] sm:$0xff] }
  0x20   : > { %1048 = vmatpush3.xpose.msk.msra.mxu0 %vm368_vm0, %v293_v15  ;;  %v283_v40 = vld [vmem:[%s1346_s14 + $0x18] sm:$0xff]  ;;  %v298_v41 = vld [vmem:[%s1346_s14 + $0x90] sm:$0xff]  ;;  %v297_v43 = vld [vmem:[%s1346_s14 + $0x88] sm:$0xff] }
  0x21   : > { %330 = vperm.xlu1 %1133, %v320_v13   ;;  %1049 = vmatprep.subr.msk.mxu0 %vm368_vm0, %v308_v16  ;;  %v282_v42 = vld [vmem:[%s1346_s14 + $0x10] sm:$0xff]  ;;  %v281_v44 = vld [vmem:[%s1346_s14 + $0x8] sm:$0xff]  ;;  %v296_v45 = vld [vmem:[%s1346_s14 + $0x80] sm:$0xff] }
  0x22   : > { %335 = vperm.xlu0 %1132, %v321_v14   ;;  %v280_v46 = vld [vmem:[%s1346_s14] sm:$0xff]  ;;  %v313_v47 = vld [vmem:[%s1592_s1 + $0x8] sm:$0xff]  ;;  %v314_v48 = vld [vmem:[%s1592_s1 + $0x10] sm:$0xff]  ;;  %s912_s14 = scalar_lea.sflag [#allocation3], %s270_s15 }
  0x23   : > { %v315_v49 = vld [vmem:[%s1592_s1 + $0x18] sm:$0xff]  ;;  %v316_v50 = vld [vmem:[%s1592_s1 + $0x20] sm:$0xff]  ;;  %v317_v51 = vld [vmem:[%s1592_s1 + $0x28] sm:$0xff] }
  0x24   : > { %1050 = vmatpush3.xpose.msk.msra.mxu0 %vm368_vm0, %v292_v19  ;;  %v318_v52 = vld [vmem:[%s1592_s1 + $0x30] sm:$0xff]  ;;  %v319_v53 = vld [vmem:[%s1592_s1 + $0x38] sm:$0xff] }
  0x25   : > { %702 = vperm.xlu1 %1133, %v688_v17   ;;  %1051 = vmatprep.subr.msk.mxu0 %vm368_vm0, %v307_v20 }
  0x26   : > { %707 = vperm.xlu0 %1132, %v689_v18  }
  0x28   : > { %1052 = vmatpush3.xpose.msk.msra.mxu0 %vm368_vm0, %v291_v23 }
  0x29   : > { %692 = vperm.xlu1 %1133, %v686_v21   ;;  %1053 = vmatprep.subr.msk.mxu0 %vm368_vm0, %v306_v24 }
  0x2a   : > { %697 = vperm.xlu0 %1132, %v687_v22  }
  0x2c   : > { %1054 = vmatpush3.xpose.msk.msra.mxu0 %vm368_vm0, %v290_v26 }
  0x2d   : > { %1055 = vmatprep.subr.msk.mxu0 %vm368_vm0, %v305_v27 }
  0x2e   : > { %824 = vperm.xlu0 %1132, %v821_v25  }
  0x30   : > { %1056 = vmatpush3.xpose.msk.msra.mxu0 %vm368_vm0, %v289_v28 }
  0x31   : > { %1057 = vmatprep.subr.msk.mxu0 %vm368_vm0, %v304_v29 }
  0x34   : > { %1058 = vmatpush3.xpose.msk.msra.mxu0 %vm368_vm0, %v288_v30 }
  0x35   : > { %1059 = vmatprep.subr.msk.mxu0 %vm368_vm0, %v303_v31 }
  0x38   : > { %1060 = vmatpush3.xpose.msk.msra.mxu0 %vm368_vm0, %v287_v32 }
  0x39   : > { %1061 = vmatprep.subr.msk.mxu0 %vm368_vm0, %v302_v33 }
  0x3c   : > { %1062 = vmatpush3.xpose.msk.msra.mxu0 %vm368_vm0, %v286_v34 }
  0x3d   : > { %1063 = vmatprep.subr.msk.mxu0 %vm368_vm0, %v301_v35 }
  0x40   : > { %1064 = vmatpush3.xpose.msk.msra.mxu0 %vm368_vm0, %v285_v36 }
  0x41   : > { %1065 = vmatprep.subr.msk.mxu0 %vm368_vm0, %v300_v37 }
  0x44   : > { %1066 = vmatpush3.xpose.msk.msra.mxu0 %vm368_vm0, %v284_v38 }
  0x45   : > { %1067 = vmatprep.subr.msk.mxu0 %vm368_vm0, %v299_v39 }
  0x48   : > { %1068 = vmatpush3.xpose.msk.msra.mxu0 %vm368_vm0, %v283_v40 }
  0x49   : > { %1069 = vmatprep.subr.msk.mxu0 %vm368_vm0, %v298_v41 }
  0x4c   : > { %1070 = vmatpush3.xpose.msk.msra.mxu0 %vm368_vm0, %v282_v42 }
  0x4d   : > { %1071 = vmatprep.subr.msk.mxu0 %vm368_vm0, %v297_v43 }
  0x50   : > { %1072 = vmatpush3.xpose.msk.msra.mxu0 %vm368_vm0, %v281_v44 }
  0x51   : > { %1073 = vmatprep.subr.msk.mxu0 %vm368_vm0, %v296_v45 }
  0x54   : > { %1074 = vmatpush3.xpose.msk.msra.mxu0 %vm368_vm0, %v280_v46 }
  0x57   : > { %1076 = vmatmul.mubr.msk.f32.vlgmr.msra.gmra.mxu0 %vm368_vm0, %v1327_v0 }
  0x58   : > { %1077 = vmatprep.mubr.msk.f32.mxu0 %vm368_vm0, %v313_v47 }
  0x5b   : > { %1078 = vmatmul.mubr.msk.f32.gmra.mxu0 %vm368_vm0, %v313_v47 }
  0x5c   : > { %1079 = vmatprep.mubr.msk.f32.mxu0 %vm368_vm0, %v314_v48 }
  0x5f   : > { %1080 = vmatmul.mubr.msk.f32.gmra.mxu0 %vm368_vm0, %v314_v48 }
  0x60   : > { %1081 = vmatprep.mubr.msk.f32.mxu0 %vm368_vm0, %v315_v49 }
  0x63   : > { %1082 = vmatmul.mubr.msk.f32.gmra.mxu0 %vm368_vm0, %v315_v49 }
  0x64   : > { %1083 = vmatprep.mubr.msk.f32.mxu0 %vm368_vm0, %v316_v50 }
  0x67   : > { %1084 = vmatmul.mubr.msk.f32.gmra.mxu0 %vm368_vm0, %v316_v50 }
  0x68   : > { %1085 = vmatprep.mubr.msk.f32.mxu0 %vm368_vm0, %v317_v51 }
  0x6b   : > { %1086 = vmatmul.mubr.msk.f32.gmra.mxu0 %vm368_vm0, %v317_v51 }
  0x6c   : > { %1087 = vmatprep.mubr.msk.f32.mxu0 %vm368_vm0, %v318_v52 }
  0x6f   : > { %1088 = vmatmul.mubr.msk.f32.gmra.mxu0 %vm368_vm0, %v318_v52 }
  0x70   : > { %1089 = vmatprep.mubr.msk.f32.mxu0 %vm368_vm0, %v319_v53 }
  0x73   : > { %1090 = vmatmul.mubr.msk.f32.gmra.mxu0 %vm368_vm0, %v319_v53 }
  0x90   : > { %v356_v63 = vpop.permute.xlu1 %355 }
  0x91   : > { %v366_v62 = vpop.permute.xlu0 %365 }
  0x94   : > { %v351_v4 = vpop.permute.xlu1 %350 }
  0x95   : > { %v361_v3 = vpop.permute.xlu0 %360 }
  0x98   : > { %v341_v16 = vpop.permute.xlu1 %340 }
  0x99   : > { %v346_v10 = vpop.permute.xlu0 %345 }
  0x9c   : > { %v331_v33 = vpop.permute.xlu1 %330 }
  0x9d   : > { %v336_v27 = vpop.permute.xlu0 %335 }
 0x117   : > { %v555_v55 = vpop.f32.mrf.mxu0 }
 0x118   : > { %v1515_v41 = vadd.f32 %v555_v55, %v331_v33 }
 0x119   : > { %v557_v56 = vpop.f32.mrf.mxu0 }
 0x11a   : > { %v1512_v39 = vadd.f32 %v557_v56, %v331_v33  ;;  %v602_v46 = vmul.f32 0.5, %v1515_v41 }
 0x11b   : > { %v561_v57 = vpop.f32.mrf.mxu0 }
 0x11c   : > { %v1509_v37 = vadd.f32 %v561_v57, %v336_v27  ;;  %v603_v45 = vmul.f32 0.5, %v1512_v39 }
 0x11d   : > { %v563_v58 = vpop.f32.mrf.mxu0 }
 0x11e   : > { %v1506_v34 = vadd.f32 %v563_v58, %v336_v27  ;;  %v604_v44 = vmul.f32 0.5, %v1509_v37 }
 0x11f   : > { %v567_v59 = vpop.f32.mrf.mxu0 }
 0x120   : > { %v1502_v30 = vadd.f32 %v567_v59, %v341_v16  ;;  %v605_v43 = vmul.f32 0.5, %v1506_v34 }
 0x121   : > { %v569_v60 = vpop.f32.mrf.mxu0 }
 0x122   : > { %v1500_v28 = vadd.f32 %v569_v60, %v341_v16  ;;  %v606_v42 = vmul.f32 0.5, %v1502_v30 }
 0x123   : > { %v573_v61 = vpop.f32.mrf.mxu0 }
 0x124   : > { %v1495_v23 = vadd.f32 %v573_v61, %v346_v10  ;;  %v607_v40 = vmul.f32 0.5, %v1500_v28 }
 0x125   : > { %v575_v0 = vpop.f32.mrf.mxu0 }
 0x126   : > { %v1492_v21 = vadd.f32 %v575_v0, %v346_v10  ;;  %v608_v38 = vmul.f32 0.5, %v1495_v23 }
 0x127   : > { %v579_v1 = vpop.f32.mrf.mxu0 }
 0x128   : > { %v1488_v18 = vadd.f32 %v579_v1, %v351_v4  ;;  %v609_v35 = vmul.f32 0.5, %v1492_v21 }
 0x129   : > { %v581_v2 = vpop.f32.mrf.mxu0 }
 0x12a   : > { %v1477_v6 = vadd.f32 %v581_v2, %v351_v4  ;;  %v610_v31 = vmul.f32 0.5, %v1488_v18 }
 0x12b   : > { %v585_v5 = vpop.f32.mrf.mxu0 }
 0x12c   : > { %v1479_v7 = vadd.f32 %v585_v5, %v356_v63  ;;  %v611_v11 = vmul.f32 0.5, %v1477_v6 }
 0x12d   : > { %v587_v8 = vpop.f32.mrf.mxu0 }
 0x12e   : > { %v1482_v12 = vadd.f32 %v587_v8, %v356_v63  ;;  %v612_v14 = vmul.f32 0.5, %v1479_v7  ;;  %1134 = vtanh.f32 %v611_v11 }
 0x12f   : > { %v591_v9 = vpop.f32.mrf.mxu0 }
 0x130   : > { %v1484_v13 = vadd.f32 %v591_v9, %v361_v3  ;;  %v613_v22 = vmul.f32 0.5, %v1482_v12  ;;  %1136 = vtanh.f32 %v612_v14 }
 0x131   : > { %v593_v15 = vpop.f32.mrf.mxu0 }
 0x132   : > { %v614_v17 = vmul.f32 0.5, %v1484_v13  ;;  %v1490_v19 = vadd.f32 %v593_v15, %v361_v3 }
 0x133   : > { %v597_v20 = vpop.f32.mrf.mxu0 }
 0x134   : > { %v615_v24 = vmul.f32 0.5, %v1490_v19  ;;  %v1498_v25 = vadd.f32 %v597_v20, %v366_v62  ;;  %1138 = vtanh.f32 %v614_v17 }
 0x135   : > { %v599_v26 = vpop.f32.mrf.mxu0 }
 0x136   : > { %v600_v29 = vadd.f32 %v599_v26, %v366_v62  ;;  %1140 = vtanh.f32 %v615_v24  ;;  %v616_v32 = vmul.f32 0.5, %v1498_v25 }
 0x137   : > { %1142 = vtanh.f32 %v613_v22 }
 0x138   : > { %v617_v36 = vmul.f32 0.5, %v600_v29  ;;  %1144 = vtanh.f32 %v616_v32 }
 0x13a   : > { %1146 = vtanh.f32 %v617_v36 }
 0x13b   : > { %1148 = vtanh.f32 %v610_v31  ;;  %v1135_v47 = vpop.eup %1134 }
 0x13c   : > { %1150 = vtanh.f32 %v609_v35  ;;  %v643_v1 = vmul.f32 0.5, %v1135_v47 }
 0x13d   : > { %1152 = vtanh.f32 %v608_v38  ;;  %v1137_v48 = vpop.eup %1136 }
 0x13e   : > { %1154 = vtanh.f32 %v607_v40  ;;  %v644_v62 = vmul.f32 0.5, %v1137_v48  ;;  %v659_v26 = vadd.f32 0.5, %v643_v1 }
 0x13f   : > { %1156 = vtanh.f32 %v606_v42 }
 0x140   : > { %1158 = vtanh.f32 %v605_v43  ;;  %v660_v17 = vadd.f32 0.5, %v644_v62 }
 0x141   : > { %1160 = vtanh.f32 %v604_v44  ;;  %v1139_v49 = vpop.eup %1138 }
 0x142   : > { %1162 = vtanh.f32 %v603_v45  ;;  %v646_v56 = vmul.f32 0.5, %v1139_v49  ;;  %v676_v43 = vmul.f32 %v660_v17, %v1479_v7  ;;  %v675_v45 = vmul.f32 %v659_v26, %v1477_v6 }
 0x143   : > { %1164 = vtanh.f32 %v602_v46  ;;  %v1141_v50 = vpop.eup %1140 }
 0x144   : > { %v1143_v51 = vpop.eup %1142  ;;  %v647_v53 = vmul.f32 0.5, %v1141_v50  ;;  %v662_v8 = vadd.f32 0.5, %v646_v56 }
 0x145   : > { %v1145_v52 = vpop.eup %1144  ;;  %v645_v59 = vmul.f32 0.5, %v1143_v51 }
 0x146   : > { %v648_v57 = vmul.f32 0.5, %v1145_v52  ;;  %v663_v2 = vadd.f32 0.5, %v647_v53  ;;  %v678_v35 = vmul.f32 %v662_v8, %v1484_v13 }
 0x147   : > { %v1147_v55 = vpop.eup %1146  ;;  %v661_v11 = vadd.f32 0.5, %v645_v59 }
 0x148   : > { %v1149_v58 = vpop.eup %1148  ;;  %v649_v60 = vmul.f32 0.5, %v1147_v55  ;;  %v664_v63 = vadd.f32 0.5, %v648_v57  ;;  %v679_v27 = vmul.f32 %v663_v2, %v1490_v19 }
 0x149   : > { %v1151_v61 = vpop.eup %1150  ;;  %v642_v5 = vmul.f32 0.5, %v1149_v58  ;;  %v677_v40 = vmul.f32 %v661_v11, %v1482_v12  ;;  %v708_v58 = vpop.permute.xlu0 %707 }
 0x14a   : > { %v1153_v0 = vpop.eup %1152  ;;  %v665_v3 = vadd.f32 0.5, %v649_v60  ;;  %v641_v10 = vmul.f32 0.5, %v1151_v61  ;;  %v680_v20 = vmul.f32 %v664_v63, %v1498_v25  ;;  %v703_v60 = vpop.permute.xlu1 %702 }
 0x14b   : > { %v1155_v4 = vpop.eup %1154  ;;  %v640_v16 = vmul.f32 0.5, %v1153_v0  ;;  %v658_v33 = vadd.f32 0.5, %v642_v5 }
 0x14c   : > { %v1157_v9 = vpop.eup %1156  ;;  %v681_v14 = vmul.f32 %v665_v3, %v600_v29  ;;  %v639_v24 = vmul.f32 0.5, %v1155_v4  ;;  %v657_v29 = vadd.f32 0.5, %v641_v10 }
 0x14d   : > { %v1159_v15 = vpop.eup %1158  ;;  %v638_v32 = vmul.f32 0.5, %v1157_v9  ;;  %v656_v25 = vadd.f32 0.5, %v640_v16  ;;  %v674_v13 = vmul.f32 %v658_v33, %v1488_v18  ;;  %v698_v2 = vpop.permute.xlu0 %697 }
 0x14e   : > { %v1161_v22 = vpop.eup %1160  ;;  %739 = vmatprep.subr.mxu1 %v681_v14  ;;  %v637_v38 = vmul.f32 0.5, %v1159_v15  ;;  %v655_v19 = vadd.f32 0.5, %v639_v24  ;;  %v673_v49 = vmul.f32 %v657_v29, %v1492_v21  ;;  %v693_v8 = vpop.permute.xlu1 %692  ;;  %v820_v24 = vld [vmem:[%s1596_s5] sm:$0xff] }
 0x14f   : > { %v1163_v31 = vpop.eup %1162  ;;  %740 = vmatpush1.msra.mxu1 %v680_v20  ;;  %v636_v42 = vmul.f32 0.5, %v1161_v22  ;;  %v654_v47 = vadd.f32 0.5, %v638_v32  ;;  %v672_v50 = vmul.f32 %v656_v25, %v1495_v23 }
 0x150   : > { %v1165_v36 = vpop.eup %1164  ;;  %741 = vmatprep.subr.mxu1 %v679_v27  ;;  %v635_v44 = vmul.f32 0.5, %v1163_v31  ;;  %v653_v48 = vadd.f32 0.5, %v637_v38  ;;  %v671_v51 = vmul.f32 %v655_v19, %v1500_v28  ;;  %v682_v28 = vld [vmem:[%s1594_s3] sm:$0xff] }
 0x151   : > { %742 = vmatpush1.msra.mxu1 %v678_v35  ;;  %v634_v46 = vmul.f32 0.5, %v1165_v36  ;;  %v652_v12 = vadd.f32 0.5, %v636_v42  ;;  %v670_v6 = vmul.f32 %v654_v47, %v1502_v30  ;;  %v683_v30 = vld [vmem:[%s1594_s3 + $0x8] sm:$0xff]  ;;  %v825_v26 = vpop.permute.xlu0 %824 }
 0x152   : > { %743 = vmatprep.subr.mxu1 %v677_v40  ;;  %v651_v7 = vadd.f32 0.5, %v635_v44  ;;  %v669_v53 = vmul.f32 %v653_v48, %v1506_v34  ;;  %v684_v34 = vld [vmem:[%s1594_s3 + $0x10] sm:$0xff] }
 0x153   : > { %744 = vmatpush1.msra.mxu1 %v676_v43  ;;  %v650_v52 = vadd.f32 0.5, %v634_v46  ;;  %v668_v18 = vmul.f32 %v652_v12, %v1509_v37  ;;  %v685_v37 = vld [vmem:[%s1594_s3 + $0x18] sm:$0xff] }
 0x154   : > { %745 = vmatprep.subr.mxu1 %v675_v45  ;;  %v667_v21 = vmul.f32 %v651_v7, %v1512_v39 }
 0x155   : > { %746 = vmatpush1.msra.mxu1 %v674_v13  ;;  %v666_v23 = vmul.f32 %v650_v52, %v1515_v41 }
 0x156   : > { %747 = vmatprep.subr.mxu1 %v673_v49 }
 0x157   : > { %748 = vmatpush1.msra.mxu1 %v672_v50 }
 0x158   : > { %749 = vmatprep.subr.mxu1 %v671_v51 }
 0x159   : > { %750 = vmatpush1.msra.mxu1 %v670_v6 }
 0x15a   : > { %751 = vmatprep.subr.mxu1 %v669_v53 }
 0x15b   : > { %752 = vmatpush1.msra.mxu1 %v668_v18 }
 0x15c   : > { %753 = vmatprep.subr.mxu1 %v667_v21 }
 0x15d   : > { %754 = vmatpush1.msra.mxu1 %v666_v23 }
 0x15e   : > { %1032 = vmatmul.mubr.msk.f32.vlgmr.msra.gmra.mxu1 %vm710_vm1, %v682_v28 }
 0x15f   : > { %793 = vmatprep.mubr.f32.mxu1 %v1233_v54 }
 0x162   : > { %1033 = vmatmul.mubr.msk.f32.gmra.mxu1 %vm710_vm1, %v683_v30 }
 0x163   : > { %799 = vmatprep.mubr.f32.mxu1 %v1233_v54 }
 0x166   : > { %1034 = vmatmul.mubr.msk.f32.gmra.mxu1 %vm710_vm1, %v684_v34 }
 0x167   : > { %805 = vmatprep.mubr.f32.mxu1 %v1233_v54 }
 0x16a   : > { %1035 = vmatmul.mubr.msk.f32.gmra.mxu1 %vm710_vm1, %v685_v37 }
 0x16b   : > { %894 = vmatprep.mubr.f32.mxu1 %v1233_v54 }
 0x21e   : > { %v789_v39 = vpop.f32.mrf.mxu1 }
 0x21f   : > { %v790_v14 = vadd.f32 %v789_v39, %v693_v8 }
 0x220   : > { %v791_v41 = vpop.f32.mrf.mxu1 }
 0x221   : > { %v792_v10 = vadd.f32 %v791_v41, %v693_v8  ;;  %v812_v22 = vmax.f32 %v790_v14, 0.0 }
 0x222   : > { %v795_v55 = vpop.f32.mrf.mxu1 }
 0x223   : > { %v796_v9 = vadd.f32 %v795_v55, %v698_v2  ;;  %v813_v20 = vmax.f32 %v792_v10, 0.0 }
 0x224   : > { %v797_v56 = vpop.f32.mrf.mxu1 }
 0x225   : > { %v798_v4 = vadd.f32 %v797_v56, %v698_v2  ;;  %v814_v17 = vmax.f32 %v796_v9, 0.0 }
 0x226   : > { %v801_v57 = vpop.f32.mrf.mxu1 }
 0x227   : > { %v802_v3 = vadd.f32 %v801_v57, %v703_v60  ;;  %v815_v16 = vmax.f32 %v798_v4, 0.0 }
 0x228   : > { %v803_v59 = vpop.f32.mrf.mxu1 }
 0x229   : > { %v804_v0 = vadd.f32 %v803_v59, %v703_v60  ;;  %v816_v15 = vmax.f32 %v802_v3, 0.0 }
 0x22a   : > { %v807_v61 = vpop.f32.mrf.mxu1 }
 0x22b   : > { %v808_v62 = vadd.f32 %v807_v61, %v708_v58  ;;  %v817_v11 = vmax.f32 %v804_v0, 0.0 }
 0x22c   : > { %v809_v63 = vpop.f32.mrf.mxu1 }
 0x22d   : > { %v810_v1 = vadd.f32 %v809_v63, %v708_v58  ;;  %v818_v54 = vmax.f32 %v808_v62, 0.0 }
 0x22f   : > { %v819_v5 = vmax.f32 %v810_v1, 0.0 }
 0x231   : > { %854 = vmatprep.subr.mxu1 %v819_v5 }
 0x232   : > { %855 = vmatpush1.msra.mxu1 %v818_v54 }
 0x233   : > { %856 = vmatprep.subr.mxu1 %v817_v11 }
 0x234   : > { %857 = vmatpush1.msra.mxu1 %v816_v15 }
 0x235   : > { %858 = vmatprep.subr.mxu1 %v815_v16 }
 0x236   : > { %859 = vmatpush1.msra.mxu1 %v814_v17 }
 0x237   : > { %860 = vmatprep.subr.mxu1 %v813_v20 }
 0x238   : > { %861 = vmatpush1.msra.mxu1 %v812_v22 }
 0x239   : > { %1036 = vmatmul.mubr.msk.f32.vlgmr.msra.gmra.mxu1 %vm368_vm0, %v820_v24 }
 0x2f9   : > { %v896_v27 = vpop.f32.mrf.mxu1 }
 0x2fa   : > { %v897_v31 = vadd.f32 %v896_v27, %v825_v26 }
 0x2fb   : > { %v898_v32 = vpop.f32.mrf.mxu1 }
 0x2fc   : > { %v901_v33 = vmul.f32 0.5, %v897_v31  ;;  %v899_v35 = vadd.f32 %v898_v32, %v825_v26 }
 0x2fe   : > { %1166 = vtanh.f32 %v901_v33  ;;  %v902_v36 = vmul.f32 0.5, %v899_v35 }
 0x300   : > { %1168 = vtanh.f32 %v902_v36 }
 0x30b   : > { %v1167_v38 = vpop.eup %1166 }
 0x30c   : > { %v905_v29 = vmul.f32 0.5, %v1167_v38 }
 0x30d   : > { %v1169_v40 = vpop.eup %1168 }
 0x30e   : > { %v907_v42 = vadd.f32 0.5, %v905_v29  ;;  %v906_v25 = vmul.f32 0.5, %v1169_v40 }
 0x310   : > { %v908_v43 = vadd.f32 0.5, %v906_v25  ;;  %909 = vst [vmem:[%s272_s18] sm:$0xff] %v907_v42 }
 0x312   : > { %910 = vst [vmem:[%s272_s18 + $0x8] sm:$0xff] %v908_v43 }
 0x313   : > { %1183 = shalt.err (!%p1180_p3)
}
 0x314   : > { %s1184_s9 = scalar_lea.hbm %s924_s22, 256  ;;  %s1188_s16 = scalar_lea.hbm %s1598_s7, 512 }
 0x315   : > { %p1185_p4 = scmp.ne.s32.totalorder %s924_s22, %s1184_s9  ;;  %p1189_p9 = scmp.lt.s32.totalorder %s924_s22, %s1598_s7 }
 0x316   : > { %p1190_p10 = scmp.lt.s32.totalorder %s1188_s16, %s1184_s9 }
 0x317   : > { %p1186_p7 = pnand %p1185_p4, %p1313_p5 }
 0x318   : > { %p1191_p11 = por %p1190_p10, %p1189_p9 }
 0x319   : > { %p1187_p8 = pneg %p1186_p7 }
 0x31b   : > { %p1192_p12 = pnand %p1191_p11, %p1187_p8 }
 0x31d   : > { %1195 = shalt.err (!%p1192_p12)
}
 0x31e   : > { %1091 = dma.vmem_to_hbm [thread:$0]  (%p1313_p5), %s927_s19, 256, %s924_s22, %s912_s14  }
 0x31f PF: > { %p1097_p13 = scmp.ge.s32.totalorder %s1230_s27, 2  ;;  %s938_s20 = sand.u32 1, %s1218_s24  }
 0x320   : > { %s939_s21 = scalar_lea.sflag [#allocation3], %s938_s20 }
 0x321   : > { %p1094_p0 = pnand %p1097_p13, %p1317_p6 }
 0x323   : > { %p1095_p1 = pneg %p1094_p0 }
 0x325   : > { %1213 = dma.done.wait (%p1095_p1), %s939_s21, 256  }
 0x326   : > { %1215 = vsyncadd (%p1095_p1), %s939_s21, 4294967040  ;;  %p17_p2 = scmp.ge.s32.totalorder %s1300_s30, 4   ;;  %s1601_s24 = smov %s1222_s25 }
 0x327   : > { %s1602_s25 = smov %s1226_s26  ;;  %s1603_s26 = smov %s1311_s10 }
 0x328   : > { %s1604_s27 = smov %s1300_s30  ;;  %19 = sbr.rel (!%p17_p2) target bundleno = 3 (0x3), region = 83 }
 0x32d   :  { %944 = vsyncpa [#allocation3], 1 }
 0x32e   :  { %946 = vsyncpa [#allocation3 + $0x1], 1 }

</bundles_post_ra>
